<compile_context>
chip_gen: v5e
topology: v5e:2x2
jax: 0.10.0
libtpu: 0.0.40
codegen_flags: <defaults>
</compile_context>

<pallas_src>
import functools

import jax
import jax.numpy as jnp
from jax.experimental import pallas as pl
from jax.experimental.pallas import tpu as pltpu


def _round_up(x, m):
    return ((x + m - 1) // m) * m


# ---------------------------------------------------------------------------
# Kernel body
# ---------------------------------------------------------------------------
def res_layer_kernel(x_ref, w1_ref, b1_ref, w2_ref, b2_ref, o_ref):
    # y = relu(x @ W1 + b1)   (MXU matmul, f32 accumulation).
    y = jnp.dot(x_ref[...].astype(w1_ref.dtype), w1_ref[...],
                preferred_element_type=jnp.float32)
    y = jnp.maximum(y + b1_ref[...].astype(jnp.float32), 0.0)

    # dropout (inference mode) == identity.
    # TODO(synk): training-mode dropout via pltpu.prng_seed/prng_random_bits.

    # y = relu(y @ W2 + b2)
    y = jnp.dot(y.astype(w2_ref.dtype), w2_ref[...],
                preferred_element_type=jnp.float32)
    y = jnp.maximum(y + b2_ref[...].astype(jnp.float32), 0.0)

    # Residual add: re-read x from the resident VMEM input block (short live
    # range; avoids vreg spills at large row tiles).  D is a multiple of 128
    # in practice -> unmasked lane-dense vst on the store path.
    o_ref[...] = (x_ref[...].astype(jnp.float32) + y).astype(o_ref.dtype)


# ---------------------------------------------------------------------------
# One-time capability / hardware probes (cached; never re-run per call)
# ---------------------------------------------------------------------------
_SINGLE_BUFFER_OK = None
_VMEM_CAP = None


def _probe_kernel(x_ref, o_ref):
    o_ref[...] = x_ref[...]


def _single_buffer_supported():
    """One-time probe: does this jax build accept pipeline_mode=pl.Buffered(1)
    on a pallas_call BlockSpec?  Result is cached in a module global."""
    global _SINGLE_BUFFER_OK
    if _SINGLE_BUFFER_OK is None:
        try:
            call = pl.pallas_call(
                _probe_kernel,
                out_shape=jax.ShapeDtypeStruct((8, 128), jnp.float32),
                grid=(1,),
                in_specs=[pl.BlockSpec(
                    (8, 128), lambda i: (0, 0),
                    pipeline_mode=pl.Buffered(buffer_count=1))],
                out_specs=pl.BlockSpec((8, 128), lambda i: (0, 0)),
            )
            jax.jit(call).lower(
                jax.ShapeDtypeStruct((8, 128), jnp.float32)).compile()
            _SINGLE_BUFFER_OK = True
        except Exception:  # capability probe only; real kernel errors surface later
            _SINGLE_BUFFER_OK = False
    return _SINGLE_BUFFER_OK


def _tpu_vmem_capacity_bytes():
    """Generation-aware VMEM capacity (128 MiB v5e/v6e, 64 MiB per TC v7x)."""
    global _VMEM_CAP
    if _VMEM_CAP is None:
        try:
            _VMEM_CAP = int(pltpu.get_tpu_info().vmem_capacity_bytes)
        except Exception:  # conservative fallback (v7x per-TC size)
            _VMEM_CAP = 64 << 20
    return _VMEM_CAP


def _vmem_limit(tile_n, d, x_dtype, w_dtype, single_buffer):
    x_item = jnp.dtype(x_dtype).itemsize
    w_item = jnp.dtype(w_dtype).itemsize
    w_bufs = 1 if single_buffer else 2
    est = (w_bufs * 2 * d * d * w_item       # W1 + W2 (resident)
           + w_bufs * 2 * d * w_item         # biases
           + 2 * 2 * tile_n * d * x_item     # x / out tiles, double-buffered
           + 3 * tile_n * d * 4)             # f32 intermediates
    cap = _tpu_vmem_capacity_bytes()
    # 2x headroom, >= 16 MiB, <= 75% of physical VMEM (96 MiB v6e, 48 MiB v7x).
    return int(min(max(2 * est, 16 << 20), (cap * 3) // 4))


# ---------------------------------------------------------------------------
# pallas_call builder
# ---------------------------------------------------------------------------
def _build_call(n_rows, d, tile_n, x_dtype, w_dtype, single_buffer, vmem_limit):
    if single_buffer:
        # Grid-invariant operands: constant index_map, nothing to prefetch ->
        # single-buffer to halve their VMEM footprint.
        def const_spec(shape):
            return pl.BlockSpec(shape, lambda i: (0, 0),
                                pipeline_mode=pl.Buffered(buffer_count=1))
    else:
        def const_spec(shape):
            return pl.BlockSpec(shape, lambda i: (0, 0))

    x_item = jnp.dtype(x_dtype).itemsize
    w_item = jnp.dtype(w_dtype).itemsize
    flops = 4 * n_rows * d * d + 4 * n_rows * d          # 2 matmuls + elementwise
    bytes_accessed = 2 * n_rows * d * x_item + (2 * d * d + 2 * d) * w_item

    return pl.pallas_call(
        res_layer_kernel,
        out_shape=jax.ShapeDtypeStruct((n_rows, d), x_dtype),
        grid_spec=pltpu.PrefetchScalarGridSpec(
            num_scalar_prefetch=0,
            grid=(pl.cdiv(n_rows, tile_n),),
            in_specs=[
                pl.BlockSpec((tile_n, d), lambda i: (i, 0)),  # x row tile
                const_spec((d, d)),                           # W1 (resident)
                const_spec((1, d)),                           # b1
                const_spec((d, d)),                           # W2 (resident)
                const_spec((1, d)),                           # b2
            ],
            out_specs=pl.BlockSpec((tile_n, d), lambda i: (i, 0)),
        ),
        compiler_params=pltpu.CompilerParams(
            dimension_semantics=("parallel",),
            vmem_limit_bytes=vmem_limit,
        ),
        cost_estimate=pl.CostEstimate(
            flops=flops, transcendentals=0, bytes_accessed=bytes_accessed),
    )


# ---------------------------------------------------------------------------
# Jitted wrapper: pad(8) -> pallas_call -> slice, all fused under one jit.
# ---------------------------------------------------------------------------
@functools.partial(jax.jit, static_argnames=("tile_n", "single_buffer"))
def _res_layer_impl(x, w1, b1, w2, b2, *, tile_n, single_buffer):
    N, D = x.shape

    # Pad rows only to the 8-sublane boundary (NOT to tile_n).
    n8 = _round_up(max(N, 1), 8)

    # Row tile: requested size, sublane-aligned, never bigger than the batch.
    tile = max(8, min(_round_up(tile_n, 8), n8))
    # Ensure >= 2 grid steps when the batch allows it so the "parallel" row
    # axis can be sharded across v7x's two TensorCores (no-op on v5e/v6e).
    if n8 > 8 and pl.cdiv(n8, tile) < 2:
        tile = max(8, _round_up(pl.cdiv(n8, 2), 8))

    vmem_limit = _vmem_limit(tile, D, x.dtype, w1.dtype, single_buffer)

    x_p = x if n8 == N else jnp.pad(x, ((0, n8 - N), (0, 0)))
    out = _build_call(n8, D, tile, x.dtype, w1.dtype,
                      single_buffer, vmem_limit)(x_p, w1, b1, w2, b2)
    return out if n8 == N else out[:N]


def res_layer(x, w1, b1, w2, b2, *, tile_n=512):
    """x: (N, D); w1, w2: (D, D) pre-transposed (computes x @ W + b); b: (1, D).

    Weights/biases may be bf16 (halves resident VMEM + weight DMA); matmul
    accumulation stays f32 and the output keeps x's dtype."""
    return _res_layer_impl(x, w1, b1, w2, b2, tile_n=int(tile_n),
                           single_buffer=_single_buffer_supported())


def res_layer_ref(x, w1, b1, w2, b2):
    y = jnp.maximum(x @ w1 + b1, 0.0)
    y = jnp.maximum(y @ w2 + b2, 0.0)
    return x + y


if __name__ == "__main__":
    key = jax.random.PRNGKey(0)
    D = 128    # linear_size
    N = 512    # batch rows (two grid steps at the default tile)

    k_x, k_w1, k_b1, k_w2, k_b2 = jax.random.split(key, 5)

    # Deterministic parameter init mimicking torch.nn.Linear:
    # U(-1/sqrt(fan_in), 1/sqrt(fan_in)) for both weight and bias.
    bound = 1.0 / (D ** 0.5)
    x = jax.random.normal(k_x, (N, D), dtype=jnp.float32)
    w1 = jax.random.uniform(k_w1, (D, D), jnp.float32, -bound, bound)
    b1 = jax.random.uniform(k_b1, (1, D), jnp.float32, -bound, bound)
    w2 = jax.random.uniform(k_w2, (D, D), jnp.float32, -bound, bound)
    b2 = jax.random.uniform(k_b2, (1, D), jnp.float32, -bound, bound)

    # f32 path.
    out = jax.block_until_ready(res_layer(x, w1, b1, w2, b2))
    ref = res_layer_ref(x, w1, b1, w2, b2)
    assert out.shape == (N, D)
    assert jnp.allclose(out, ref, atol=1e-5, rtol=1e-5), "mismatch vs reference"

    # Ragged batch: cdiv grid + ragged last block (no pad-to-tile copies).
    x_r = x[:100]
    out_r = jax.block_until_ready(res_layer(x_r, w1, b1, w2, b2))
    ref_r = res_layer_ref(x_r, w1, b1, w2, b2)
    assert out_r.shape == (100, D)
    assert jnp.allclose(out_r, ref_r, atol=1e-5, rtol=1e-5), "ragged mismatch"

    # bf16 weight path (half resident-weight VMEM / DMA, native MXU rate).
    wb = lambda a: a.astype(jnp.bfloat16)
    out_b = jax.block_until_ready(res_layer(x, wb(w1), wb(b1), wb(w2), wb(b2)))
    ref_b = res_layer_ref(x,
                          wb(w1).astype(jnp.float32), wb(b1).astype(jnp.float32),
                          wb(w2).astype(jnp.float32), wb(b2).astype(jnp.float32))
    assert out_b.shape == (N, D)
    assert jnp.allclose(out_b, ref_b, atol=5e-2, rtol=5e-2), "bf16 mismatch"

    print("KERNEL_OK")
</pallas_src>

<mosaic_0001>
module attributes {stable_mosaic.version = 11 : i64} {
  func.func @res_layer_kernel(%arg0: i32, %arg1: memref<256x128xf32, #tpu.memory_space<vmem>>, %arg2: memref<128x128xf32, #tpu.memory_space<vmem>>, %arg3: memref<1x128xf32, #tpu.memory_space<vmem>>, %arg4: memref<128x128xf32, #tpu.memory_space<vmem>>, %arg5: memref<1x128xf32, #tpu.memory_space<vmem>>, %arg6: memref<256x128xf32, #tpu.memory_space<vmem>>) attributes {dimension_semantics = [#tpu.dimension_semantics<parallel>], iteration_bounds = array<i64: 2>, scalar_prefetch = 0 : i64, scratch_operands = 0 : i64, tpu.core_type = #tpu.core_type<tc>, window_params = [{transform_indices = @transform_0, window_bounds = array<i64: 256, 128>}, {pipeline_mode = #tpu.pipeline_mode<synchronous>, transform_indices = @transform_1, window_bounds = array<i64: 128, 128>}, {pipeline_mode = #tpu.pipeline_mode<synchronous>, transform_indices = @transform_2, window_bounds = array<i64: 1, 128>}, {pipeline_mode = #tpu.pipeline_mode<synchronous>, transform_indices = @transform_3, window_bounds = array<i64: 128, 128>}, {pipeline_mode = #tpu.pipeline_mode<synchronous>, transform_indices = @transform_4, window_bounds = array<i64: 1, 128>}, {transform_indices = @transform_5, window_bounds = array<i64: 256, 128>}]} {
    %c0 = arith.constant 0 : index
    %c0_0 = arith.constant 0 : index
    %0 = vector.load %arg1[%c0, %c0_0] : memref<256x128xf32, #tpu.memory_space<vmem>>, vector<256x128xf32>
    %c0_1 = arith.constant 0 : index
    %c0_2 = arith.constant 0 : index
    %1 = vector.load %arg2[%c0_1, %c0_2] : memref<128x128xf32, #tpu.memory_space<vmem>>, vector<128x128xf32>
    %cst = arith.constant dense<0.000000e+00> : vector<256x128xf32>
    %2 = tpu.matmul %0, %1, %cst {dimension_numbers = #tpu.dot_dimension_numbers<[1], [0], [0], [1], [0, 0, 1, 1], [], []>} : vector<256x128xf32>, vector<128x128xf32>, vector<256x128xf32> -> vector<256x128xf32>
    %c0_3 = arith.constant 0 : index
    %c0_4 = arith.constant 0 : index
    %3 = vector.load %arg3[%c0_3, %c0_4] : memref<1x128xf32, #tpu.memory_space<vmem>>, vector<1x128xf32>
    %4 = vector.broadcast %3 : vector<1x128xf32> to vector<256x128xf32>
    %5 = arith.addf %2, %4 : vector<256x128xf32>
    %cst_5 = arith.constant 0.000000e+00 : f32
    %6 = vector.broadcast %cst_5 : f32 to vector<256x128xf32>
    %7 = arith.maximumf %5, %6 : vector<256x128xf32>
    %c0_6 = arith.constant 0 : index
    %c0_7 = arith.constant 0 : index
    %8 = vector.load %arg4[%c0_6, %c0_7] : memref<128x128xf32, #tpu.memory_space<vmem>>, vector<128x128xf32>
    %cst_8 = arith.constant dense<0.000000e+00> : vector<256x128xf32>
    %9 = tpu.matmul %7, %8, %cst_8 {dimension_numbers = #tpu.dot_dimension_numbers<[1], [0], [0], [1], [0, 0, 1, 1], [], []>} : vector<256x128xf32>, vector<128x128xf32>, vector<256x128xf32> -> vector<256x128xf32>
    %c0_9 = arith.constant 0 : index
    %c0_10 = arith.constant 0 : index
    %10 = vector.load %arg5[%c0_9, %c0_10] : memref<1x128xf32, #tpu.memory_space<vmem>>, vector<1x128xf32>
    %11 = vector.broadcast %10 : vector<1x128xf32> to vector<256x128xf32>
    %12 = arith.addf %9, %11 : vector<256x128xf32>
    %cst_11 = arith.constant 0.000000e+00 : f32
    %13 = vector.broadcast %cst_11 : f32 to vector<256x128xf32>
    %14 = arith.maximumf %12, %13 : vector<256x128xf32>
    %c0_12 = arith.constant 0 : index
    %c0_13 = arith.constant 0 : index
    %15 = vector.load %arg1[%c0_12, %c0_13] : memref<256x128xf32, #tpu.memory_space<vmem>>, vector<256x128xf32>
    %16 = arith.addf %15, %14 : vector<256x128xf32>
    %c0_14 = arith.constant 0 : index
    %c0_15 = arith.constant 0 : index
    %17 = vector.load %arg6[%c0_14, %c0_15] : memref<256x128xf32, #tpu.memory_space<vmem>>, vector<256x128xf32>
    tpu.vector_store %arg6[%c0_14, %c0_15], %16 {strides = array<i32>} : memref<256x128xf32, #tpu.memory_space<vmem>>, vector<256x128xf32>,
    return
  }
  func.func @transform_0(%arg0: i32) -> (i32, i32) {
    %c0_i32 = arith.constant 0 : i32
    %c0_i32_0 = arith.constant 0 : i32
    return %arg0, %c0_i32 : i32, i32
  }
  func.func @transform_1(%arg0: i32) -> (i32, i32) {
    %c0_i32 = arith.constant 0 : i32
    %c0_i32_0 = arith.constant 0 : i32
    %c0_i32_1 = arith.constant 0 : i32
    return %c0_i32, %c0_i32_0 : i32, i32
  }
  func.func @transform_2(%arg0: i32) -> (i32, i32) {
    %c0_i32 = arith.constant 0 : i32
    %c0_i32_0 = arith.constant 0 : i32
    %c0_i32_1 = arith.constant 0 : i32
    return %c0_i32, %c0_i32_0 : i32, i32
  }
  func.func @transform_3(%arg0: i32) -> (i32, i32) {
    %c0_i32 = arith.constant 0 : i32
    %c0_i32_0 = arith.constant 0 : i32
    %c0_i32_1 = arith.constant 0 : i32
    return %c0_i32, %c0_i32_0 : i32, i32
  }
  func.func @transform_4(%arg0: i32) -> (i32, i32) {
    %c0_i32 = arith.constant 0 : i32
    %c0_i32_0 = arith.constant 0 : i32
    %c0_i32_1 = arith.constant 0 : i32
    return %c0_i32, %c0_i32_0 : i32, i32
  }
  func.func @transform_5(%arg0: i32) -> (i32, i32) {
    %c0_i32 = arith.constant 0 : i32
    %c0_i32_0 = arith.constant 0 : i32
    return %arg0, %c0_i32 : i32, i32
  }
}

</mosaic_0001>

<bundles_post_ra>
// kernel: _res_layer_impl.1
= control target key start
LH: loop header
LB: loop body
LE: loop exit
PB: predicated region body
PF: predicated region fallthrough
CT: control target
= control target key end

     0   :  { %10 = vsyncpa [#allocation3], 0  ;;  %s1562_s0 = inlined_call_operand.hbm [shape: f32[512,128], index: 0, kind: input, shape index: {}]   ;;  %s1563_s1 = inlined_call_operand.hbm [shape: f32[128,128], index: 1, kind: input, shape index: {}]   ;;  %s1564_s2 = inlined_call_operand.vmem [shape: f32[1,128], index: 2, kind: input, shape index: {}]   ;;  %s1565_s3 = inlined_call_operand.hbm [shape: f32[128,128], index: 3, kind: input, shape index: {}]   ;;  %s1566_s4 = inlined_call_operand.vmem [shape: f32[1,128], index: 4, kind: input, shape index: {}]   ;;  %s1567_s5 = inlined_call_operand.hbm [shape: f32[512,128], index: 5, kind: output, shape index: {}]  }
   0x1   :  { %12 = vsyncpa [#allocation3 + $0x1], 0 }
   0x2   :  { %13 = vsyncpa [#allocation6], 0 }
   0x3   :  { %14 = vsyncpa [#allocation4], 0 }
   0x4   :  { %16 = vsyncpa [#allocation4 + $0x1], 0  ;;  %s1137_s18 = smov 0   ;;  %s1139_s19 = smov 0  }
   0x5   :  { %s1141_s20 = smov 0   ;;  %s1143_s21 = smov 0  }
   0x6 LB: > { %s1158_s22 = sadd.s32 4294967295, %s1099_s21   ;;  %s814_s23 = sadd.s32 4294967294, %s1099_s21   ;;  %s1099_s21 = sphi %s1143_s21, %s1579_s21   ;;  %s1095_s20 = sphi %s1141_s20, %s1578_s20   ;;  %s1091_s19 = sphi %s1139_s19, %s1577_s19   ;;  %s1087_s18 = sphi %s1137_s18, %s1576_s18  }
   0x7   : > { %p42_p0 = scmp.ne.s32.totalorder %s1091_s19, %s1087_s18  ;;  %p43_p1 = scmp.eq.s32.totalorder %s1158_s22, 0 }
   0x8   : > { %p150_p2 = scmp.eq.s32.totalorder %s1158_s22, 1  ;;  %p156_p3 = scmp.eq.s32.totalorder %s814_s23, 1 }
   0x9   : > { %p1167_p4 = por %p43_p1, %p42_p0  ;;  %p815_p5 = scmp.ge.s32.totalorder %s1099_s21, 1 }
   0xa   : > { %p1172_p6 = por %p156_p3, %p42_p0  ;;  %p163_p7 = scmp.lt.s32.totalorder %s1099_s21, 3 }
   0xb   : > { %s174_s28 = sshll.u32 %s1563_s1, 4  ;;  %s1101_s30 = smov [#allocation5]   ;;  %s175_s28 = int_to_ptr.hbm [resolvable:$true] %s174_s28 }
   0xc   : > { %p1180_p8 = pnand %p815_p5, %p163_p7  ;;  %s176_s6 = sshll.u32 %s1101_s30, 4  ;;  %s177_s6 = int_to_ptr.vmem [resolvable:$true] %s176_s6 }
   0xd   : > { %s191_s9 = sshll.u32 %s1565_s3, 4  ;;  %s1568_s10 = smov 128   ;;  %s192_s9 = int_to_ptr.hbm [resolvable:$true] %s191_s9 }
   0xe   : > { %p878_p9 = pneg %p1180_p8  ;;  %s1103_s11 = smov 8  }
   0xf   : > { %s1104_s12 = smov [#allocation7]   ;;  %s1199_s14 = sadd.s32 1, %s1099_s21  }
  0x10   : > { %p879_p10 = pnand %p878_p9, %p43_p1  ;;  %s193_s13 = sshll.u32 %s1104_s12, 4  ;;  %s194_s13 = int_to_ptr.vmem [resolvable:$true] %s193_s13 }
  0x11   : > { %s29_s15 = sadd.s32 1, %s1095_s20  ;;  %s26_s16 = ssub.s32 %s1099_s21, %s1199_s14 }
  0x12   : > { %881 = dma.hbm_to_vmem [thread:$0]  (!%p879_p10), %s175_s28, 2048, %s177_s6, [#allocation6], %s1568_s10, %s1568_s10, %s1103_s11  }
  0x13   : > { %884 = dma.hbm_to_vmem [thread:$0]  (!%p879_p10), %s192_s9, 2048, %s194_s13, [#allocation6], %s1568_s10, %s1568_s10, %s1103_s11  }
  0x14   : > { %p36_p12 = scmp.ne.s32.totalorder %s1095_s20, %s1091_s19  ;;  %p27_p13 = scmp.eq.s32.totalorder %s26_s16, 0 }
  0x15   : > { %p37_p0 = scmp.eq.s32.totalorder %s1099_s21, 0  ;;  %p895_p5 = scmp.lt.s32.totalorder %s1099_s21, 2 }
  0x16   : > { %p1209_p3 = por %p150_p2, %p36_p12  ;;  %s210_s26 = sand.u32 1, %s1095_s20  }
  0x17   : > { %s1215_s23 = scalar_select %p27_p13, %s1095_s20, %s29_s15  }
  0x18   : > { %p38_p7 = por %p37_p0, %p36_p12  ;;  %s819_s27 = sshll.u32 %s210_s26, 8 }
  0x19   : > { %s832_s28 = sshll.u32 %s1099_s21, 8  ;;  %s214_s8 = scalar_lea.vmem [#allocation2], %s819_s27 }
  0x1a   : > { %s219_s7 = scalar_lea.hbm %s1562_s0, %s832_s28  ;;  %s222_s9 = sshll.u32 %s214_s8, 4  ;;  %s223_s9 = int_to_ptr.vmem [resolvable:$true] %s222_s9 }
  0x1b   : > { %s220_s12 = sshll.u32 %s219_s7, 4  ;;  %p1222_p2 = pnand %p895_p5, %p38_p7  ;;  %s221_s12 = int_to_ptr.hbm [resolvable:$true] %s220_s12 }
  0x1c   : > { %s211_s15 = scalar_lea.sflag [#allocation3], %s210_s26  ;;  %s999_s16 = sshra.s32 %s221_s12, 4  ;;  %s1000_s16 = int_to_ptr.hbm [resolvable:$true] %s999_s16 }
  0x1d   : > { %s1001_s10 = scalar_lea.hbm %s1000_s16, 256  ;;  %p1003_p10 = pneg %p1222_p2 }
  0x1e   : > { %p1002_p9 = scmp.ne.s32.totalorder %s1000_s16, %s1001_s10  ;;  %s1006_s30 = scalar_lea.hbm %s1562_s0, 512 }
  0x1f   : > { %p1007_p0 = scmp.lt.s32.totalorder %s1000_s16, %s1562_s0  ;;  %p1008_p5 = scmp.lt.s32.totalorder %s1006_s30, %s1001_s10 }
  0x20   : > { %p1004_p12 = pnand %p1003_p10, %p1002_p9 }
  0x21   : > { %p1009_p7 = por %p1008_p5, %p1007_p0 }
  0x22   : > { %p1005_p13 = pneg %p1004_p12 }
  0x24   : > { %p1010_p11 = pnand %p1009_p7, %p1005_p13 }
  0x26   : > { %1013 = shalt.err (!%p1010_p11)
}
  0x27   : > { %s1574_s26 = smov 128   ;;  %234 = sbr.rel (%p1180_p8) target bundleno = 477 (0x1dd), region = 40 }
  0x28   : > { %888 = dma.hbm_to_vmem [thread:$0]  (!%p1222_p2), %s221_s12, 4096, %s223_s9, %s211_s15, %s1574_s26, %s1574_s26, %s1103_s11  }
  0x29   : > { %s1242_s8 = sand.u32 (!%p1180_p8), 1, %s1091_s19  }
  0x2a   : > { %s823_s10 = sshll.u32 (!%p1180_p8), %s1242_s8, 8  ;;  %s237_s16 = scalar_lea.sflag (!%p1180_p8), [#allocation3], %s1242_s8 }
  0x2b   : > { %s1248_s28 = scalar_lea.vmem (!%p1180_p8), [#allocation2], %s823_s10 }
  0x2c   : > { %1074 = dma.done.wait (%p1167_p4), %s237_s16, 4096  }
  0x2d   : > { %1076 = vsyncadd (%p1167_p4), %s237_s16, 4294963200 }
  0x2e   : > { %1078 = dma.done.wait (%p43_p1), [#allocation6], 4096  }
  0x2f   : > { %1080 = vsyncadd (%p43_p1), [#allocation6], 4294963200  ;;  %v327_v0 = vld [vmem:[#allocation5 + $0x78] sm:$0xff]  ;;  %v326_v1 = vld [vmem:[#allocation5 + $0x70] sm:$0xff]  ;;  %s1432_s12 = scalar_lea.vmem [#allocation8], %s823_s10  ;;  %s833_s13 = sshll.u32 %s1158_s22, 8 }
  0x30   : > { %834 = vmatpush.msra.mxu2 %v327_v0  ;;  %332 = vmatpush.msra.mxu0 %v327_v0  ;;  %v325_v2 = vld [vmem:[#allocation5 + $0x68] sm:$0xff]  ;;  %v324_v3 = vld [vmem:[#allocation5 + $0x60] sm:$0xff]  ;;  %v323_v4 = vld [vmem:[#allocation5 + $0x58] sm:$0xff]  ;;  %s718_s30 = scalar_lea.hbm %s1567_s5, %s833_s13  ;;  %s719_s6 = sshll.u32 %s1432_s12, 4  ;;  %s720_s6 = int_to_ptr.vmem [resolvable:$true] %s719_s6 }
  0x31   : > { %v322_v5 = vld [vmem:[#allocation5 + $0x50] sm:$0xff]  ;;  %v321_v6 = vld [vmem:[#allocation5 + $0x48] sm:$0xff]  ;;  %v320_v7 = vld [vmem:[#allocation5 + $0x40] sm:$0xff]  ;;  %s721_s7 = sshll.u32 %s718_s30, 4  ;;  %s707_s22 = scalar_lea.sflag [#allocation4], %s1242_s8  ;;  %s722_s7 = int_to_ptr.hbm [resolvable:$true] %s721_s7 }
  0x32   : > { %835 = vmatpush.msra.mxu2 %v326_v1  ;;  %333 = vmatpush.msra.mxu0 %v326_v1  ;;  %v319_v8 = vld [vmem:[#allocation5 + $0x38] sm:$0xff]  ;;  %v318_v9 = vld [vmem:[#allocation5 + $0x30] sm:$0xff]  ;;  %v317_v10 = vld [vmem:[#allocation5 + $0x28] sm:$0xff]  ;;  %s1043_s26 = sshra.s32 %s722_s7, 4  ;;  %s1049_s24 = scalar_lea.hbm %s1567_s5, 512  ;;  %s1044_s26 = int_to_ptr.hbm [resolvable:$true] %s1043_s26 }
  0x33   : > { %v316_v11 = vld [vmem:[#allocation5 + $0x20] sm:$0xff]  ;;  %v315_v12 = vld [vmem:[#allocation5 + $0x18] sm:$0xff]  ;;  %v314_v13 = vld [vmem:[#allocation5 + $0x10] sm:$0xff]  ;;  %s1045_s10 = scalar_lea.hbm %s1044_s26, 256  ;;  %p1050_p11 = scmp.lt.s32.totalorder %s1044_s26, %s1567_s5 }
  0x34   : > { %836 = vmatpush.msra.mxu2 %v325_v2  ;;  %334 = vmatpush.msra.mxu0 %v325_v2  ;;  %v313_v14 = vld [vmem:[#allocation5 + $0x8] sm:$0xff]  ;;  %v312_v15 = vld [vmem:[#allocation5] sm:$0xff]  ;;  %v1275_v20 = vld [vmem:[%s1248_s28 + $0x90] sm:$0xff]  ;;  %p1046_p1 = scmp.ne.s32.totalorder %s1044_s26, %s1045_s10  ;;  %p1051_p2 = scmp.lt.s32.totalorder %s1049_s24, %s1045_s10 }
  0x35   : > { %v1259_v16 = vld [vmem:[%s1248_s28 + $0x80] sm:$0xff]  ;;  %v1267_v18 = vld [vmem:[%s1248_s28 + $0x88] sm:$0xff]  ;;  %v1278_v21 = vld [vmem:[%s1248_s28 + $0x10] sm:$0xff] }
  0x36   : > { %837 = vmatpush.msra.mxu2 %v324_v3  ;;  %335 = vmatpush.msra.mxu0 %v324_v3  ;;  %v1262_v17 = vld [vmem:[%s1248_s28] sm:$0xff]  ;;  %v1270_v19 = vld [vmem:[%s1248_s28 + $0x8] sm:$0xff]  ;;  %v1283_v22 = vld [vmem:[%s1248_s28 + $0x98] sm:$0xff]  ;;  %p1047_p4 = pnand %p1046_p1, %p1209_p3  ;;  %p1052_p9 = por %p1051_p2, %p1050_p11 }
  0x37   : > { %v1286_v23 = vld [vmem:[%s1248_s28 + $0x18] sm:$0xff]  ;;  %v1291_v24 = vld [vmem:[%s1248_s28 + $0xa0] sm:$0xff]  ;;  %v1299_v26 = vld [vmem:[%s1248_s28 + $0xa8] sm:$0xff] }
  0x38   : > { %838 = vmatpush.msra.mxu2 %v323_v4  ;;  %336 = vmatpush.msra.mxu0 %v323_v4  ;;  %v1294_v25 = vld [vmem:[%s1248_s28 + $0x20] sm:$0xff]  ;;  %v1302_v27 = vld [vmem:[%s1248_s28 + $0x28] sm:$0xff]  ;;  %v1307_v28 = vld [vmem:[%s1248_s28 + $0xb0] sm:$0xff]  ;;  %p1048_p8 = pneg %p1047_p4 }
  0x39   : > { %v1310_v29 = vld [vmem:[%s1248_s28 + $0x30] sm:$0xff]  ;;  %v1315_v30 = vld [vmem:[%s1248_s28 + $0xb8] sm:$0xff]  ;;  %v1323_v32 = vld [vmem:[%s1248_s28 + $0xc0] sm:$0xff] }
  0x3a   : > { %839 = vmatpush.msra.mxu2 %v322_v5  ;;  %337 = vmatpush.msra.mxu0 %v322_v5  ;;  %v1318_v31 = vld [vmem:[%s1248_s28 + $0x38] sm:$0xff]  ;;  %v1326_v33 = vld [vmem:[%s1248_s28 + $0x40] sm:$0xff]  ;;  %v1331_v34 = vld [vmem:[%s1248_s28 + $0xc8] sm:$0xff]  ;;  %p1053_p10 = pnand %p1052_p9, %p1048_p8 }
  0x3b   : > { %v1334_v35 = vld [vmem:[%s1248_s28 + $0x48] sm:$0xff]  ;;  %v492_v36 = vld [vmem:[#allocation7 + $0x78] sm:$0xff]  ;;  %v491_v37 = vld [vmem:[#allocation7 + $0x70] sm:$0xff] }
  0x3c   : > { %840 = vmatpush.msra.mxu2 %v321_v6  ;;  %338 = vmatpush.msra.mxu0 %v321_v6  ;;  %v490_v38 = vld [vmem:[#allocation7 + $0x68] sm:$0xff]  ;;  %v489_v39 = vld [vmem:[#allocation7 + $0x60] sm:$0xff]  ;;  %v1339_v40 = vld [vmem:[%s1248_s28 + $0xd0] sm:$0xff] }
  0x3d   : > { %850 = vmatpush.msra.mxu3 %v492_v36  ;;  %497 = vmatpush.msra.mxu1 %v492_v36  ;;  %v1342_v41 = vld [vmem:[%s1248_s28 + $0x50] sm:$0xff]  ;;  %v488_v42 = vld [vmem:[#allocation7 + $0x58] sm:$0xff]  ;;  %v486_v44 = vld [vmem:[#allocation7 + $0x48] sm:$0xff] }
  0x3e   : > { %841 = vmatpush.msra.mxu2 %v320_v7  ;;  %339 = vmatpush.msra.mxu0 %v320_v7  ;;  %v487_v43 = vld [vmem:[#allocation7 + $0x50] sm:$0xff]  ;;  %v485_v45 = vld [vmem:[#allocation7 + $0x40] sm:$0xff]  ;;  %v1347_v46 = vld [vmem:[%s1248_s28 + $0xd8] sm:$0xff] }
  0x3f   : > { %851 = vmatpush.msra.mxu3 %v491_v37  ;;  %498 = vmatpush.msra.mxu1 %v491_v37  ;;  %v1350_v47 = vld [vmem:[%s1248_s28 + $0x58] sm:$0xff]  ;;  %v483_v49 = vld [vmem:[#allocation7 + $0x30] sm:$0xff]  ;;  %v482_v50 = vld [vmem:[#allocation7 + $0x28] sm:$0xff] }
  0x40   : > { %842 = vmatpush.msra.mxu2 %v319_v8  ;;  %340 = vmatpush.msra.mxu0 %v319_v8  ;;  %v484_v48 = vld [vmem:[#allocation7 + $0x38] sm:$0xff]  ;;  %v481_v51 = vld [vmem:[#allocation7 + $0x20] sm:$0xff]  ;;  %v479_v55 = vld [vmem:[#allocation7 + $0x10] sm:$0xff] }
  0x41   : > { %852 = vmatpush.msra.mxu3 %v490_v38  ;;  %499 = vmatpush.msra.mxu1 %v490_v38  ;;  %v1355_v52 = vld [vmem:[%s1248_s28 + $0xe0] sm:$0xff]  ;;  %v480_v54 = vld [vmem:[#allocation7 + $0x18] sm:$0xff]  ;;  %v478_v56 = vld [vmem:[#allocation7 + $0x8] sm:$0xff] }
  0x42   : > { %843 = vmatpush.msra.mxu2 %v318_v9  ;;  %341 = vmatpush.msra.mxu0 %v318_v9  ;;  %v1358_v53 = vld [vmem:[%s1248_s28 + $0x60] sm:$0xff]  ;;  %v1363_v57 = vld [vmem:[%s1248_s28 + $0xe8] sm:$0xff]  ;;  %v1371_v60 = vld [vmem:[%s1248_s28 + $0xf0] sm:$0xff] }
  0x43   : > { %853 = vmatpush.msra.mxu3 %v489_v39  ;;  %500 = vmatpush.msra.mxu1 %v489_v39  ;;  %v1366_v58 = vld [vmem:[%s1248_s28 + $0x68] sm:$0xff]  ;;  %v477_v59 = vld [vmem:[#allocation7] sm:$0xff]  ;;  %v1374_v61 = vld [vmem:[%s1248_s28 + $0x70] sm:$0xff] }
  0x44   : > { %844 = vmatpush.msra.mxu2 %v317_v10  ;;  %342 = vmatpush.msra.mxu0 %v317_v10  ;;  %v1379_v62 = vld [vmem:[%s1248_s28 + $0xf8] sm:$0xff]  ;;  %v1389_v0 = vld [vmem:[%s1564_s2] ss:$0 sm:$0xff] }
  0x45   : > { %854 = vmatpush.msra.mxu3 %v488_v42  ;;  %501 = vmatpush.msra.mxu1 %v488_v42  ;;  %v1382_v63 = vld [vmem:[%s1248_s28 + $0x78] sm:$0xff] }
  0x46   : > { %845 = vmatpush.msra.mxu2 %v316_v11  ;;  %343 = vmatpush.msra.mxu0 %v316_v11 }
  0x47   : > { %855 = vmatpush.msra.mxu3 %v487_v43  ;;  %502 = vmatpush.msra.mxu1 %v487_v43 }
  0x48   : > { %846 = vmatpush.msra.mxu2 %v315_v12  ;;  %344 = vmatpush.msra.mxu0 %v315_v12 }
  0x49   : > { %856 = vmatpush.msra.mxu3 %v486_v44  ;;  %503 = vmatpush.msra.mxu1 %v486_v44 }
  0x4a   : > { %847 = vmatpush.msra.mxu2 %v314_v13  ;;  %345 = vmatpush.msra.mxu0 %v314_v13 }
  0x4b   : > { %857 = vmatpush.msra.mxu3 %v485_v45  ;;  %504 = vmatpush.msra.mxu1 %v485_v45 }
  0x4c   : > { %848 = vmatpush.msra.mxu2 %v313_v14  ;;  %346 = vmatpush.msra.mxu0 %v313_v14 }
  0x4d   : > { %858 = vmatpush.msra.mxu3 %v484_v48  ;;  %505 = vmatpush.msra.mxu1 %v484_v48 }
  0x4e   : > { %849 = vmatpush.msra.mxu2 %v312_v15  ;;  %347 = vmatpush.msra.mxu0 %v312_v15 }
  0x4f   : > { %396 = vmatmul.f32.vlgmr.msra.gmra.mxu2 %v1259_v16  ;;  %348 = vmatmul.f32.vlgmr.msra.gmra.mxu0 %v1262_v17 }
  0x50   : > { %859 = vmatpush.msra.mxu3 %v483_v49  ;;  %506 = vmatpush.msra.mxu1 %v483_v49 }
  0x52   : > { %860 = vmatpush.msra.mxu3 %v482_v50  ;;  %507 = vmatpush.msra.mxu1 %v482_v50 }
  0x54   : > { %861 = vmatpush.msra.mxu3 %v481_v51  ;;  %508 = vmatpush.msra.mxu1 %v481_v51 }
  0x56   : > { %862 = vmatpush.msra.mxu3 %v480_v54  ;;  %509 = vmatpush.msra.mxu1 %v480_v54 }
  0x57   : > { %399 = vmatmul.f32.gmra.mxu2 %v1267_v18  ;;  %351 = vmatmul.f32.gmra.mxu0 %v1270_v19 }
  0x58   : > { %863 = vmatpush.msra.mxu3 %v479_v55  ;;  %510 = vmatpush.msra.mxu1 %v479_v55 }
  0x5a   : > { %864 = vmatpush.msra.mxu3 %v478_v56  ;;  %511 = vmatpush.msra.mxu1 %v478_v56 }
  0x5c   : > { %865 = vmatpush.msra.mxu3 %v477_v59  ;;  %512 = vmatpush.msra.mxu1 %v477_v59 }
  0x5f   : > { %402 = vmatmul.f32.gmra.mxu2 %v1275_v20  ;;  %354 = vmatmul.f32.gmra.mxu0 %v1278_v21 }
  0x67   : > { %405 = vmatmul.f32.gmra.mxu2 %v1283_v22  ;;  %357 = vmatmul.f32.gmra.mxu0 %v1286_v23 }
  0x6f   : > { %408 = vmatmul.f32.gmra.mxu2 %v1291_v24  ;;  %360 = vmatmul.f32.gmra.mxu0 %v1294_v25 }
  0x77   : > { %411 = vmatmul.f32.gmra.mxu2 %v1299_v26  ;;  %363 = vmatmul.f32.gmra.mxu0 %v1302_v27 }
  0x7f   : > { %414 = vmatmul.f32.gmra.mxu2 %v1307_v28  ;;  %366 = vmatmul.f32.gmra.mxu0 %v1310_v29 }
  0x87   : > { %417 = vmatmul.f32.gmra.mxu2 %v1315_v30  ;;  %369 = vmatmul.f32.gmra.mxu0 %v1318_v31 }
  0x8f   : > { %420 = vmatmul.f32.gmra.mxu2 %v1323_v32  ;;  %372 = vmatmul.f32.gmra.mxu0 %v1326_v33 }
  0x97   : > { %423 = vmatmul.f32.gmra.mxu2 %v1331_v34  ;;  %375 = vmatmul.f32.gmra.mxu0 %v1334_v35 }
  0x9f   : > { %426 = vmatmul.f32.gmra.mxu2 %v1339_v40  ;;  %378 = vmatmul.f32.gmra.mxu0 %v1342_v41 }
  0xa7   : > { %429 = vmatmul.f32.gmra.mxu2 %v1347_v46  ;;  %381 = vmatmul.f32.gmra.mxu0 %v1350_v47 }
  0xaf   : > { %432 = vmatmul.f32.gmra.mxu2 %v1355_v52  ;;  %384 = vmatmul.f32.gmra.mxu0 %v1358_v53 }
  0xb7   : > { %435 = vmatmul.f32.gmra.mxu2 %v1363_v57  ;;  %387 = vmatmul.f32.gmra.mxu0 %v1366_v58 }
  0xbf   : > { %438 = vmatmul.f32.gmra.mxu2 %v1371_v60  ;;  %390 = vmatmul.f32.gmra.mxu0 %v1374_v61 }
  0xc7   : > { %441 = vmatmul.f32.gmra.mxu2 %v1379_v62  ;;  %393 = vmatmul.f32.gmra.mxu0 %v1382_v63 }
  0xcc   : > { %v349_v1 = vpop.f32.mrf.mxu0 }
  0xcd   : > { %v350_v2 = vadd.f32 %v1389_v0, %v349_v1 }
  0xcf   : > { %v445_v3 = vmax.f32 %v350_v2, 0.0 }
  0xd1   : > { %513 = vmatmul.f32.vlgmr.msra.gmra.mxu1 %v445_v3 }
  0xd2   : > { %v397_v4 = vpop.f32.mrf.mxu2 }
  0xd3   : > { %v398_v5 = vadd.f32 %v1389_v0, %v397_v4 }
  0xd4   : > { %v352_v6 = vpop.f32.mrf.mxu0 }
  0xd5   : > { %v461_v7 = vmax.f32 %v398_v5, 0.0  ;;  %v353_v8 = vadd.f32 %v1389_v0, %v352_v6 }
  0xd7   : > { %561 = vmatmul.f32.vlgmr.msra.gmra.mxu3 %v461_v7  ;;  %v446_v9 = vmax.f32 %v353_v8, 0.0 }
  0xd9   : > { %516 = vmatmul.f32.gmra.mxu1 %v446_v9 }
  0xda   : > { %v400_v10 = vpop.f32.mrf.mxu2 }
  0xdb   : > { %v401_v11 = vadd.f32 %v1389_v0, %v400_v10 }
  0xdc   : > { %v355_v12 = vpop.f32.mrf.mxu0 }
  0xdd   : > { %v462_v13 = vmax.f32 %v401_v11, 0.0  ;;  %v356_v14 = vadd.f32 %v1389_v0, %v355_v12 }
  0xdf   : > { %564 = vmatmul.f32.gmra.mxu3 %v462_v13  ;;  %v447_v15 = vmax.f32 %v356_v14, 0.0 }
  0xe1   : > { %519 = vmatmul.f32.gmra.mxu1 %v447_v15 }
  0xe2   : > { %v403_v36 = vpop.f32.mrf.mxu2 }
  0xe3   : > { %v404_v37 = vadd.f32 %v1389_v0, %v403_v36 }
  0xe4   : > { %v358_v38 = vpop.f32.mrf.mxu0 }
  0xe5   : > { %v463_v39 = vmax.f32 %v404_v37, 0.0  ;;  %v359_v42 = vadd.f32 %v1389_v0, %v358_v38 }
  0xe7   : > { %567 = vmatmul.f32.gmra.mxu3 %v463_v39  ;;  %v448_v43 = vmax.f32 %v359_v42, 0.0 }
  0xe9   : > { %522 = vmatmul.f32.gmra.mxu1 %v448_v43 }
  0xea   : > { %v406_v44 = vpop.f32.mrf.mxu2 }
  0xeb   : > { %v407_v45 = vadd.f32 %v1389_v0, %v406_v44 }
  0xec   : > { %v361_v48 = vpop.f32.mrf.mxu0 }
  0xed   : > { %v464_v49 = vmax.f32 %v407_v45, 0.0  ;;  %v362_v50 = vadd.f32 %v1389_v0, %v361_v48 }
  0xef   : > { %570 = vmatmul.f32.gmra.mxu3 %v464_v49  ;;  %v449_v51 = vmax.f32 %v362_v50, 0.0 }
  0xf1   : > { %525 = vmatmul.f32.gmra.mxu1 %v449_v51 }
  0xf2   : > { %v409_v54 = vpop.f32.mrf.mxu2 }
  0xf3   : > { %v410_v55 = vadd.f32 %v1389_v0, %v409_v54 }
  0xf4   : > { %v364_v56 = vpop.f32.mrf.mxu0 }
  0xf5   : > { %v465_v59 = vmax.f32 %v410_v55, 0.0  ;;  %v365_v1 = vadd.f32 %v1389_v0, %v364_v56 }
  0xf7   : > { %573 = vmatmul.f32.gmra.mxu3 %v465_v59  ;;  %v450_v2 = vmax.f32 %v365_v1, 0.0 }
  0xf9   : > { %528 = vmatmul.f32.gmra.mxu1 %v450_v2 }
  0xfa   : > { %v412_v3 = vpop.f32.mrf.mxu2 }
  0xfb   : > { %v413_v4 = vadd.f32 %v1389_v0, %v412_v3 }
  0xfc   : > { %v367_v5 = vpop.f32.mrf.mxu0 }
  0xfd   : > { %v466_v6 = vmax.f32 %v413_v4, 0.0  ;;  %v368_v7 = vadd.f32 %v1389_v0, %v367_v5 }
  0xff   : > { %576 = vmatmul.f32.gmra.mxu3 %v466_v6  ;;  %v451_v8 = vmax.f32 %v368_v7, 0.0 }
 0x101   : > { %531 = vmatmul.f32.gmra.mxu1 %v451_v8 }
 0x102   : > { %v415_v9 = vpop.f32.mrf.mxu2 }
 0x103   : > { %v416_v10 = vadd.f32 %v1389_v0, %v415_v9 }
 0x104   : > { %v370_v11 = vpop.f32.mrf.mxu0 }
 0x105   : > { %v467_v12 = vmax.f32 %v416_v10, 0.0  ;;  %v371_v13 = vadd.f32 %v1389_v0, %v370_v11 }
 0x107   : > { %579 = vmatmul.f32.gmra.mxu3 %v467_v12  ;;  %v452_v14 = vmax.f32 %v371_v13, 0.0 }
 0x109   : > { %534 = vmatmul.f32.gmra.mxu1 %v452_v14 }
 0x10a   : > { %v418_v15 = vpop.f32.mrf.mxu2 }
 0x10b   : > { %v419_v36 = vadd.f32 %v1389_v0, %v418_v15 }
 0x10c   : > { %v373_v37 = vpop.f32.mrf.mxu0 }
 0x10d   : > { %v468_v38 = vmax.f32 %v419_v36, 0.0  ;;  %v374_v39 = vadd.f32 %v1389_v0, %v373_v37 }
 0x10f   : > { %582 = vmatmul.f32.gmra.mxu3 %v468_v38  ;;  %v453_v42 = vmax.f32 %v374_v39, 0.0 }
 0x111   : > { %537 = vmatmul.f32.gmra.mxu1 %v453_v42 }
 0x112   : > { %v421_v43 = vpop.f32.mrf.mxu2 }
 0x113   : > { %v422_v44 = vadd.f32 %v1389_v0, %v421_v43 }
 0x114   : > { %v376_v45 = vpop.f32.mrf.mxu0 }
 0x115   : > { %v469_v48 = vmax.f32 %v422_v44, 0.0  ;;  %v377_v49 = vadd.f32 %v1389_v0, %v376_v45 }
 0x117   : > { %585 = vmatmul.f32.gmra.mxu3 %v469_v48  ;;  %v454_v50 = vmax.f32 %v377_v49, 0.0 }
 0x119   : > { %540 = vmatmul.f32.gmra.mxu1 %v454_v50 }
 0x11a   : > { %v424_v51 = vpop.f32.mrf.mxu2 }
 0x11b   : > { %v425_v54 = vadd.f32 %v1389_v0, %v424_v51 }
 0x11c   : > { %v379_v55 = vpop.f32.mrf.mxu0 }
 0x11d   : > { %v470_v56 = vmax.f32 %v425_v54, 0.0  ;;  %v380_v59 = vadd.f32 %v1389_v0, %v379_v55 }
 0x11f   : > { %588 = vmatmul.f32.gmra.mxu3 %v470_v56  ;;  %v455_v1 = vmax.f32 %v380_v59, 0.0 }
 0x121   : > { %543 = vmatmul.f32.gmra.mxu1 %v455_v1 }
 0x122   : > { %v427_v2 = vpop.f32.mrf.mxu2 }
 0x123   : > { %v428_v3 = vadd.f32 %v1389_v0, %v427_v2 }
 0x124   : > { %v382_v4 = vpop.f32.mrf.mxu0 }
 0x125   : > { %v471_v5 = vmax.f32 %v428_v3, 0.0  ;;  %v383_v6 = vadd.f32 %v1389_v0, %v382_v4  ;;  %v1426_v3 = vld [vmem:[%s1566_s4] ss:$0 sm:$0xff] }
 0x127   : > { %591 = vmatmul.f32.gmra.mxu3 %v471_v5  ;;  %v456_v7 = vmax.f32 %v383_v6, 0.0 }
 0x129   : > { %546 = vmatmul.f32.gmra.mxu1 %v456_v7 }
 0x12a   : > { %v430_v8 = vpop.f32.mrf.mxu2 }
 0x12b   : > { %v431_v9 = vadd.f32 %v1389_v0, %v430_v8 }
 0x12c   : > { %v385_v10 = vpop.f32.mrf.mxu0 }
 0x12d   : > { %v472_v11 = vmax.f32 %v431_v9, 0.0  ;;  %v386_v12 = vadd.f32 %v1389_v0, %v385_v10 }
 0x12f   : > { %594 = vmatmul.f32.gmra.mxu3 %v472_v11  ;;  %v457_v13 = vmax.f32 %v386_v12, 0.0 }
 0x131   : > { %549 = vmatmul.f32.gmra.mxu1 %v457_v13 }
 0x132   : > { %v433_v14 = vpop.f32.mrf.mxu2 }
 0x133   : > { %v434_v15 = vadd.f32 %v1389_v0, %v433_v14 }
 0x134   : > { %v388_v36 = vpop.f32.mrf.mxu0 }
 0x135   : > { %v473_v37 = vmax.f32 %v434_v15, 0.0  ;;  %v389_v38 = vadd.f32 %v1389_v0, %v388_v36 }
 0x137   : > { %597 = vmatmul.f32.gmra.mxu3 %v473_v37  ;;  %v458_v39 = vmax.f32 %v389_v38, 0.0 }
 0x139   : > { %552 = vmatmul.f32.gmra.mxu1 %v458_v39 }
 0x13a   : > { %v436_v42 = vpop.f32.mrf.mxu2 }
 0x13b   : > { %v437_v43 = vadd.f32 %v1389_v0, %v436_v42 }
 0x13c   : > { %v391_v44 = vpop.f32.mrf.mxu0 }
 0x13d   : > { %v474_v45 = vmax.f32 %v437_v43, 0.0  ;;  %v392_v48 = vadd.f32 %v1389_v0, %v391_v44 }
 0x13f   : > { %600 = vmatmul.f32.gmra.mxu3 %v474_v45  ;;  %v459_v49 = vmax.f32 %v392_v48, 0.0 }
 0x141   : > { %555 = vmatmul.f32.gmra.mxu1 %v459_v49 }
 0x142   : > { %v439_v50 = vpop.f32.mrf.mxu2 }
 0x143   : > { %v440_v51 = vadd.f32 %v1389_v0, %v439_v50 }
 0x144   : > { %v394_v54 = vpop.f32.mrf.mxu0 }
 0x145   : > { %v475_v55 = vmax.f32 %v440_v51, 0.0  ;;  %v395_v56 = vadd.f32 %v1389_v0, %v394_v54 }
 0x147   : > { %603 = vmatmul.f32.gmra.mxu3 %v475_v55  ;;  %v460_v59 = vmax.f32 %v395_v56, 0.0 }
 0x149   : > { %558 = vmatmul.f32.gmra.mxu1 %v460_v59 }
 0x14a   : > { %v442_v1 = vpop.f32.mrf.mxu2 }
 0x14b   : > { %v443_v2 = vadd.f32 %v1389_v0, %v442_v1 }
 0x14d   : > { %v476_v4 = vmax.f32 %v443_v2, 0.0 }
 0x14e   : > { %v514_v5 = vpop.f32.mrf.mxu1 }
 0x14f   : > { %606 = vmatmul.f32.gmra.mxu3 %v476_v4  ;;  %v515_v6 = vadd.f32 %v1426_v3, %v514_v5 }
 0x151   : > { %v610_v7 = vmax.f32 %v515_v6, 0.0 }
 0x153   : > { %v642_v8 = vadd.f32 %v610_v7, %v1262_v17 }
 0x155   : > { %674 = vst [vmem:[%s1432_s12] sm:$0xff] %v642_v8 }
 0x156   : > { %v517_v0 = vpop.f32.mrf.mxu1 }
 0x157   : > { %v518_v9 = vadd.f32 %v1426_v3, %v517_v0 }
 0x159   : > { %v611_v10 = vmax.f32 %v518_v9, 0.0 }
 0x15a   : > { %v562_v11 = vpop.f32.mrf.mxu3 }
 0x15b   : > { %v563_v12 = vadd.f32 %v1426_v3, %v562_v11  ;;  %v643_v13 = vadd.f32 %v611_v10, %v1270_v19 }
 0x15d   : > { %v626_v14 = vmax.f32 %v563_v12, 0.0  ;;  %675 = vst [vmem:[%s1432_s12 + $0x8] sm:$0xff] %v643_v13 }
 0x15e   : > { %v520_v17 = vpop.f32.mrf.mxu1 }
 0x15f   : > { %v658_v15 = vadd.f32 %v626_v14, %v1259_v16  ;;  %v521_v36 = vadd.f32 %v1426_v3, %v520_v17 }
 0x161   : > { %690 = vst [vmem:[%s1432_s12 + $0x80] sm:$0xff] %v658_v15  ;;  %v612_v37 = vmax.f32 %v521_v36, 0.0 }
 0x162   : > { %v565_v38 = vpop.f32.mrf.mxu3 }
 0x163   : > { %v566_v39 = vadd.f32 %v1426_v3, %v565_v38  ;;  %v644_v42 = vadd.f32 %v612_v37, %v1278_v21 }
 0x165   : > { %v627_v43 = vmax.f32 %v566_v39, 0.0  ;;  %676 = vst [vmem:[%s1432_s12 + $0x10] sm:$0xff] %v644_v42 }
 0x166   : > { %v523_v19 = vpop.f32.mrf.mxu1 }
 0x167   : > { %v659_v44 = vadd.f32 %v627_v43, %v1267_v18  ;;  %v524_v45 = vadd.f32 %v1426_v3, %v523_v19 }
 0x169   : > { %691 = vst [vmem:[%s1432_s12 + $0x88] sm:$0xff] %v659_v44  ;;  %v613_v16 = vmax.f32 %v524_v45, 0.0 }
 0x16a   : > { %v568_v48 = vpop.f32.mrf.mxu3 }
 0x16b   : > { %v569_v49 = vadd.f32 %v1426_v3, %v568_v48  ;;  %v645_v50 = vadd.f32 %v613_v16, %v1286_v23 }
 0x16d   : > { %v628_v51 = vmax.f32 %v569_v49, 0.0  ;;  %677 = vst [vmem:[%s1432_s12 + $0x18] sm:$0xff] %v645_v50 }
 0x16e   : > { %v526_v21 = vpop.f32.mrf.mxu1 }
 0x16f   : > { %v660_v54 = vadd.f32 %v628_v51, %v1275_v20  ;;  %v527_v55 = vadd.f32 %v1426_v3, %v526_v21 }
 0x171   : > { %692 = vst [vmem:[%s1432_s12 + $0x90] sm:$0xff] %v660_v54  ;;  %v614_v18 = vmax.f32 %v527_v55, 0.0 }
 0x172   : > { %v571_v56 = vpop.f32.mrf.mxu3 }
 0x173   : > { %v572_v59 = vadd.f32 %v1426_v3, %v571_v56  ;;  %v646_v1 = vadd.f32 %v614_v18, %v1294_v25 }
 0x175   : > { %v629_v2 = vmax.f32 %v572_v59, 0.0  ;;  %678 = vst [vmem:[%s1432_s12 + $0x20] sm:$0xff] %v646_v1 }
 0x176   : > { %v529_v23 = vpop.f32.mrf.mxu1 }
 0x177   : > { %v661_v4 = vadd.f32 %v629_v2, %v1283_v22  ;;  %v530_v5 = vadd.f32 %v1426_v3, %v529_v23 }
 0x179   : > { %693 = vst [vmem:[%s1432_s12 + $0x98] sm:$0xff] %v661_v4  ;;  %v615_v20 = vmax.f32 %v530_v5, 0.0 }
 0x17a   : > { %v574_v6 = vpop.f32.mrf.mxu3 }
 0x17b   : > { %v575_v7 = vadd.f32 %v1426_v3, %v574_v6  ;;  %v647_v8 = vadd.f32 %v615_v20, %v1302_v27 }
 0x17d   : > { %v630_v0 = vmax.f32 %v575_v7, 0.0  ;;  %679 = vst [vmem:[%s1432_s12 + $0x28] sm:$0xff] %v647_v8 }
 0x17e   : > { %v532_v25 = vpop.f32.mrf.mxu1 }
 0x17f   : > { %v662_v9 = vadd.f32 %v630_v0, %v1291_v24  ;;  %v533_v10 = vadd.f32 %v1426_v3, %v532_v25 }
 0x181   : > { %694 = vst [vmem:[%s1432_s12 + $0xa0] sm:$0xff] %v662_v9  ;;  %v616_v22 = vmax.f32 %v533_v10, 0.0 }
 0x182   : > { %v577_v11 = vpop.f32.mrf.mxu3 }
 0x183   : > { %v578_v12 = vadd.f32 %v1426_v3, %v577_v11  ;;  %v648_v13 = vadd.f32 %v616_v22, %v1310_v29 }
 0x185   : > { %v631_v14 = vmax.f32 %v578_v12, 0.0  ;;  %680 = vst [vmem:[%s1432_s12 + $0x30] sm:$0xff] %v648_v13 }
 0x186   : > { %v535_v27 = vpop.f32.mrf.mxu1 }
 0x187   : > { %v663_v17 = vadd.f32 %v631_v14, %v1299_v26  ;;  %v536_v15 = vadd.f32 %v1426_v3, %v535_v27 }
 0x189   : > { %695 = vst [vmem:[%s1432_s12 + $0xa8] sm:$0xff] %v663_v17  ;;  %v617_v24 = vmax.f32 %v536_v15, 0.0 }
 0x18a   : > { %v580_v36 = vpop.f32.mrf.mxu3 }
 0x18b   : > { %v581_v37 = vadd.f32 %v1426_v3, %v580_v36  ;;  %v649_v38 = vadd.f32 %v617_v24, %v1318_v31 }
 0x18d   : > { %v632_v39 = vmax.f32 %v581_v37, 0.0  ;;  %681 = vst [vmem:[%s1432_s12 + $0x38] sm:$0xff] %v649_v38 }
 0x18e   : > { %v538_v29 = vpop.f32.mrf.mxu1 }
 0x18f   : > { %v664_v42 = vadd.f32 %v632_v39, %v1307_v28  ;;  %v539_v43 = vadd.f32 %v1426_v3, %v538_v29 }
 0x191   : > { %696 = vst [vmem:[%s1432_s12 + $0xb0] sm:$0xff] %v664_v42  ;;  %v618_v26 = vmax.f32 %v539_v43, 0.0 }
 0x192   : > { %v583_v19 = vpop.f32.mrf.mxu3 }
 0x193   : > { %v584_v44 = vadd.f32 %v1426_v3, %v583_v19  ;;  %v650_v45 = vadd.f32 %v618_v26, %v1326_v33 }
 0x195   : > { %v633_v16 = vmax.f32 %v584_v44, 0.0  ;;  %682 = vst [vmem:[%s1432_s12 + $0x40] sm:$0xff] %v650_v45 }
 0x196   : > { %v541_v31 = vpop.f32.mrf.mxu1 }
 0x197   : > { %v665_v48 = vadd.f32 %v633_v16, %v1315_v30  ;;  %v542_v49 = vadd.f32 %v1426_v3, %v541_v31 }
 0x199   : > { %697 = vst [vmem:[%s1432_s12 + $0xb8] sm:$0xff] %v665_v48  ;;  %v619_v28 = vmax.f32 %v542_v49, 0.0 }
 0x19a   : > { %v586_v50 = vpop.f32.mrf.mxu3 }
 0x19b   : > { %v587_v51 = vadd.f32 %v1426_v3, %v586_v50  ;;  %v651_v21 = vadd.f32 %v619_v28, %v1334_v35 }
 0x19d   : > { %v634_v54 = vmax.f32 %v587_v51, 0.0  ;;  %683 = vst [vmem:[%s1432_s12 + $0x48] sm:$0xff] %v651_v21 }
 0x19e   : > { %v544_v33 = vpop.f32.mrf.mxu1 }
 0x19f   : > { %v666_v55 = vadd.f32 %v634_v54, %v1323_v32  ;;  %v545_v18 = vadd.f32 %v1426_v3, %v544_v33 }
 0x1a1   : > { %698 = vst [vmem:[%s1432_s12 + $0xc0] sm:$0xff] %v666_v55  ;;  %v620_v30 = vmax.f32 %v545_v18, 0.0 }
 0x1a2   : > { %v589_v56 = vpop.f32.mrf.mxu3 }
 0x1a3   : > { %v590_v59 = vadd.f32 %v1426_v3, %v589_v56  ;;  %v652_v1 = vadd.f32 %v620_v30, %v1342_v41 }
 0x1a5   : > { %v635_v2 = vmax.f32 %v590_v59, 0.0  ;;  %684 = vst [vmem:[%s1432_s12 + $0x50] sm:$0xff] %v652_v1 }
 0x1a6   : > { %v547_v35 = vpop.f32.mrf.mxu1 }
 0x1a7   : > { %v667_v23 = vadd.f32 %v635_v2, %v1331_v34  ;;  %v548_v4 = vadd.f32 %v1426_v3, %v547_v35 }
 0x1a9   : > { %699 = vst [vmem:[%s1432_s12 + $0xc8] sm:$0xff] %v667_v23  ;;  %v621_v32 = vmax.f32 %v548_v4, 0.0 }
 0x1aa   : > { %v592_v5 = vpop.f32.mrf.mxu3 }
 0x1ab   : > { %v593_v20 = vadd.f32 %v1426_v3, %v592_v5  ;;  %v653_v6 = vadd.f32 %v621_v32, %v1350_v47 }
 0x1ad   : > { %v636_v7 = vmax.f32 %v593_v20, 0.0  ;;  %685 = vst [vmem:[%s1432_s12 + $0x58] sm:$0xff] %v653_v6 }
 0x1ae   : > { %v550_v41 = vpop.f32.mrf.mxu1 }
 0x1af   : > { %v668_v8 = vadd.f32 %v636_v7, %v1339_v40  ;;  %v551_v0 = vadd.f32 %v1426_v3, %v550_v41 }
 0x1b1   : > { %700 = vst [vmem:[%s1432_s12 + $0xd0] sm:$0xff] %v668_v8  ;;  %v622_v34 = vmax.f32 %v551_v0, 0.0 }
 0x1b2   : > { %v595_v25 = vpop.f32.mrf.mxu3 }
 0x1b3   : > { %v596_v9 = vadd.f32 %v1426_v3, %v595_v25  ;;  %v654_v10 = vadd.f32 %v622_v34, %v1358_v53 }
 0x1b5   : > { %v637_v22 = vmax.f32 %v596_v9, 0.0  ;;  %686 = vst [vmem:[%s1432_s12 + $0x60] sm:$0xff] %v654_v10 }
 0x1b6   : > { %v553_v47 = vpop.f32.mrf.mxu1 }
 0x1b7   : > { %v669_v11 = vadd.f32 %v637_v22, %v1347_v46  ;;  %v554_v12 = vadd.f32 %v1426_v3, %v553_v47 }
 0x1b9   : > { %701 = vst [vmem:[%s1432_s12 + $0xd8] sm:$0xff] %v669_v11  ;;  %v623_v40 = vmax.f32 %v554_v12, 0.0 }
 0x1ba   : > { %v598_v13 = vpop.f32.mrf.mxu3 }
 0x1bb   : > { %v599_v14 = vadd.f32 %v1426_v3, %v598_v13  ;;  %v655_v27 = vadd.f32 %v623_v40, %v1366_v58 }
 0x1bd   : > { %v638_v17 = vmax.f32 %v599_v14, 0.0  ;;  %687 = vst [vmem:[%s1432_s12 + $0x68] sm:$0xff] %v655_v27 }
 0x1be   : > { %v556_v53 = vpop.f32.mrf.mxu1 }
 0x1bf   : > { %v670_v15 = vadd.f32 %v638_v17, %v1355_v52  ;;  %v557_v24 = vadd.f32 %v1426_v3, %v556_v53 }
 0x1c1   : > { %702 = vst [vmem:[%s1432_s12 + $0xe0] sm:$0xff] %v670_v15  ;;  %v624_v46 = vmax.f32 %v557_v24, 0.0 }
 0x1c2   : > { %v601_v36 = vpop.f32.mrf.mxu3 }
 0x1c3   : > { %v602_v37 = vadd.f32 %v1426_v3, %v601_v36  ;;  %v656_v38 = vadd.f32 %v624_v46, %v1374_v61 }
 0x1c5   : > { %v639_v39 = vmax.f32 %v602_v37, 0.0  ;;  %688 = vst [vmem:[%s1432_s12 + $0x70] sm:$0xff] %v656_v38 }
 0x1c6   : > { %v559_v58 = vpop.f32.mrf.mxu1 }
 0x1c7   : > { %v671_v29 = vadd.f32 %v639_v39, %v1363_v57  ;;  %v560_v52 = vadd.f32 %v1426_v3, %v559_v58 }
 0x1c9   : > { %703 = vst [vmem:[%s1432_s12 + $0xe8] sm:$0xff] %v671_v29  ;;  %v625_v42 = vmax.f32 %v560_v52, 0.0 }
 0x1ca   : > { %v604_v43 = vpop.f32.mrf.mxu3 }
 0x1cb   : > { %v605_v26 = vadd.f32 %v1426_v3, %v604_v43  ;;  %v657_v19 = vadd.f32 %v625_v42, %v1382_v63 }
 0x1cd   : > { %v640_v44 = vmax.f32 %v605_v26, 0.0  ;;  %689 = vst [vmem:[%s1432_s12 + $0x78] sm:$0xff] %v657_v19 }
 0x1cf   : > { %v672_v61 = vadd.f32 %v640_v44, %v1371_v60 }
 0x1d1   : > { %704 = vst [vmem:[%s1432_s12 + $0xf0] sm:$0xff] %v672_v61 }
 0x1d2   : > { %v607_v57 = vpop.f32.mrf.mxu3 }
 0x1d3   : > { %v608_v45 = vadd.f32 %v1426_v3, %v607_v57 }
 0x1d5   : > { %v641_v16 = vmax.f32 %v608_v45, 0.0 }
 0x1d7   : > { %v673_v63 = vadd.f32 %v641_v16, %v1379_v62 }
 0x1d9   : > { %705 = vst [vmem:[%s1432_s12 + $0xf8] sm:$0xff] %v673_v63 }
 0x1da   : > { %1056 = shalt.err (!%p1053_p10)
}
 0x1db   : > { %s1105_s8 = smov 128   ;;  %s1106_s9 = smov 8  }
 0x1dc   : > { %876 = dma.vmem_to_hbm [thread:$0]  (%p1209_p3), %s720_s6, 4096, %s722_s7, %s707_s22, %s1105_s8, %s1105_s8, %s1106_s9  }
 0x1dd PF: > { %s736_s12 = sand.u32 1, %s1087_s18   ;;  %p1575_p12 = scmp.ge.s32.totalorder %s1099_s21, 2 }
 0x1de   : > { %s737_s13 = scalar_lea.sflag [#allocation4], %s736_s12 }
 0x1df   : > { %p890_p13 = pnand %p1575_p12, %p1172_p6 }
 0x1e1   : > { %p891_p0 = pneg %p890_p13 }
 0x1e3   : > { %1082 = dma.done.wait (%p891_p0), %s737_s13, 4096  }
 0x1e4   : > { %1084 = vsyncadd (%p891_p0), %s737_s13, 4294963200  ;;  %p19_p5 = scmp.ge.s32.totalorder %s1199_s14, 4   ;;  %s1576_s18 = smov %s1091_s19 }
 0x1e5   : > { %s1577_s19 = smov %s1095_s20  ;;  %s1578_s20 = smov %s1215_s23 }
 0x1e6   : > { %s1579_s21 = smov %s1199_s14  ;;  %21 = sbr.rel (!%p19_p5) target bundleno = 6 (0x6), region = 93 }
 0x1eb   :  { %743 = vsyncpa [#allocation3], 1 }
 0x1ec   :  { %745 = vsyncpa [#allocation3 + $0x1], 1 }
 0x1ed   :  { %746 = vsyncpa [#allocation6], 1 }
 0x1ee   :  { %747 = vsyncpa [#allocation4], 1 }
 0x1ef   :  { %749 = vsyncpa [#allocation4 + $0x1], 1 }

</bundles_post_ra>
